<compile_context>
chip_gen: v7x
topology: tpu7x:2x2x1
jax: 0.10.0
libtpu: 0.0.40
codegen_flags: <defaults>
</compile_context>

<pallas_src>
from functools import partial

import jax
import jax.numpy as jnp
from jax.experimental import pallas as pl
from jax.experimental.pallas import tpu as pltpu


def _fcn_head_kernel(x_ref, w1_ref, b1_ref, w2_ref, b2_ref, out_ref, *, wp):
    """One batch element per grid step, channel-major & spatially flattened.

    x_ref  : (1, Cin, P)    bf16  zero-padded NCHW-flat input, P=(H+3)*(W+2)
    w1_ref : (Cmid, 9*Cin)  bf16  3x3 conv weight, tap-major, BN scale folded in
    b1_ref : (Cmid, 1)      f32   folded BN bias
    w2_ref : (Cout, Cmid)   bf16  1x1 conv weight
    b2_ref : (Cout, 1)      f32   1x1 conv bias
    out_ref: (1, Cout, L)   f32   L=H*(W+2) (2 junk cols/row dropped in wrapper)
    wp     : W + 2 (static padded width)
    """
    L = out_ref.shape[-1]
    x = x_ref[0]                                     # (Cin, P), lives in vregs

    # im2col without strided window extraction: every 3x3 tap is a contiguous
    # flat slice (cheap shift), stacked along the contraction axis.
    cols = [x[:, dy * wp + dx: dy * wp + dx + L]
            for dy in range(3) for dx in range(3)]   # 9 x (Cin, L)
    xcol = jnp.concatenate(cols, axis=0)             # (9*Cin, L) bf16

    # 3x3 conv (+ folded BN scale) as a single bf16 MXU matmul, f32 accumulate.
    acc = jnp.dot(w1_ref[...], xcol, preferred_element_type=jnp.float32)

    # Folded BN bias + ReLU (f32 elementwise epilogue).
    y = jnp.maximum(acc + b1_ref[...], 0.0)          # (Cmid, L)

    # TODO(synk): Dropout(0.1) is identity in eval mode; training-mode random
    # masking (pltpu.prng_*) intentionally omitted to match inference forward.

    # 1x1 conv with bias as a second bf16 matmul; output is channel-major so
    # the store is lane-dense (L pixels on the lane axis).
    out = jnp.dot(w2_ref[...], y.astype(jnp.bfloat16),
                  preferred_element_type=jnp.float32) + b2_ref[...]
    out_ref[...] = out[None].astype(out_ref.dtype)


def fcn_head_forward(x_nchw, params):
    """x_nchw: (N, Cin, H, W) float32. Returns (N, Cout, H, W) float32."""
    w1 = params["w1"]            # (Cmid, Cin, 3, 3)  PyTorch OIHW
    gamma = params["bn_gamma"]   # (Cmid,)
    beta = params["bn_beta"]     # (Cmid,)
    mean = params["bn_mean"]     # (Cmid,)
    var = params["bn_var"]       # (Cmid,)
    w2 = params["w2"]            # (Cout, Cmid, 1, 1)
    b2 = params["b2"]            # (Cout,)
    eps = 1e-5

    N, Cin, H, W = x_nchw.shape
    Cmid = w1.shape[0]
    Cout = w2.shape[0]
    Wp = W + 2                   # padded width
    L = H * Wp                   # padded-width output pixels per image
    P = (H + 3) * Wp             # padded input pixels (extra zero row at the
                                 # bottom keeps the last tap slice in bounds)

    # Spatial zero pad in NCHW (no layout transpose) + flatten + bf16 cast
    # (halves the input HBM traffic).  At production sizes this one remaining
    # HBM copy of x could also be removed by handling the 1-pixel halo in-kernel.
    x_flat = jnp.pad(x_nchw.astype(jnp.bfloat16),
                     ((0, 0), (0, 0), (1, 2), (1, 1))).reshape(N, Cin, P)

    # Fold BN (eval) scale into the 3x3 weight and flatten tap-major to
    # (Cmid, 9*Cin) so the conv becomes a single matmul against the im2col.
    scale = gamma / jnp.sqrt(var + eps)                          # (Cmid,)
    w1_k = (w1 * scale[:, None, None, None])                     # (Cmid,Cin,3,3)
    w1_k = jnp.transpose(w1_k, (0, 2, 3, 1)).reshape(Cmid, 9 * Cin)
    w1_k = w1_k.astype(jnp.bfloat16)
    b1_k = (beta - mean * scale).reshape(Cmid, 1).astype(jnp.float32)
    w2_k = w2[:, :, 0, 0].astype(jnp.bfloat16)                   # (Cout, Cmid)
    b2_k = b2.reshape(Cout, 1).astype(jnp.float32)

    cost = pl.CostEstimate(
        flops=int(2 * N * L * Cmid * (9 * Cin + Cout)),
        transcendentals=0,
        bytes_accessed=int(2 * N * Cin * P + 4 * N * Cout * L
                           + 2 * (w1_k.size + w2_k.size) + 4 * (Cmid + Cout)),
    )

    out_flat = pl.pallas_call(
        partial(_fcn_head_kernel, wp=Wp),
        out_shape=jax.ShapeDtypeStruct((N, Cout, L), jnp.float32),
        grid=(N,),
        in_specs=[
            pl.BlockSpec((1, Cin, P), lambda n: (n, 0, 0)),
            pl.BlockSpec((Cmid, 9 * Cin), lambda n: (0, 0)),
            pl.BlockSpec((Cmid, 1), lambda n: (0, 0)),
            pl.BlockSpec((Cout, Cmid), lambda n: (0, 0)),
            pl.BlockSpec((Cout, 1), lambda n: (0, 0)),
        ],
        out_specs=pl.BlockSpec((1, Cout, L), lambda n: (n, 0, 0)),
        compiler_params=pltpu.CompilerParams(
            dimension_semantics=("parallel",),
        ),
        cost_estimate=cost,
    )(x_flat, w1_k, b1_k, w2_k, b2_k)

    # Drop the 2 junk columns per padded-width row; output is already NCHW.
    return out_flat.reshape(N, Cout, H, Wp)[:, :, :, :W]


def _init_params(key, in_channels, channels):
    inter = in_channels // 4
    ks = jax.random.split(key, 6)
    return {
        "w1": 0.1 * jax.random.normal(ks[0], (inter, in_channels, 3, 3), jnp.float32),
        "bn_gamma": 1.0 + 0.05 * jax.random.normal(ks[1], (inter,), jnp.float32),
        "bn_beta": 0.05 * jax.random.normal(ks[2], (inter,), jnp.float32),
        "bn_mean": 0.05 * jax.random.normal(ks[3], (inter,), jnp.float32),
        "bn_var": jnp.abs(1.0 + 0.05 * jax.random.normal(ks[4], (inter,), jnp.float32)),
        "w2": 0.1 * jax.random.normal(ks[5], (channels, inter, 1, 1), jnp.float32),
        "b2": 0.01 * jnp.arange(channels, dtype=jnp.float32),
    }


if __name__ == "__main__":
    key = jax.random.PRNGKey(0)
    k_x, k_p = jax.random.split(key)

    N, Cin, H, W = 2, 16, 16, 16   # in_channels=16 -> inter_channels=4
    Cout = 4

    x = jax.random.normal(k_x, (N, Cin, H, W), jnp.float32)
    params = _init_params(k_p, Cin, Cout)

    fwd = jax.jit(fcn_head_forward)
    out = fwd(x, params)
    jax.block_until_ready(out)

    # Pure-JAX f32 reference of the same math (kernel uses bf16 matmuls with
    # f32 accumulation -> loose tolerance).
    def ref(x, p):
        eps = 1e-5
        y = jax.lax.conv_general_dilated(
            x, p["w1"], window_strides=(1, 1), padding="SAME",
            dimension_numbers=("NCHW", "OIHW", "NCHW"))
        scale = p["bn_gamma"] / jnp.sqrt(p["bn_var"] + eps)
        y = y * scale[None, :, None, None] \
            + (p["bn_beta"] - p["bn_mean"] * scale)[None, :, None, None]
        y = jnp.maximum(y, 0.0)
        y = jax.lax.conv_general_dilated(
            y, p["w2"], window_strides=(1, 1), padding="VALID",
            dimension_numbers=("NCHW", "OIHW", "NCHW"))
        return y + p["b2"][None, :, None, None]

    expected = ref(x, params)
    assert out.shape == (N, Cout, H, W)
    max_err = float(jnp.max(jnp.abs(out - expected)))
    assert jnp.allclose(out, expected, atol=5e-2, rtol=5e-2), max_err

    print("KERNEL_OK")
</pallas_src>

<mosaic_0001>
module attributes {stable_mosaic.version = 11 : i64} {
  func.func @_fcn_head_kernel(%arg0: i32, %arg1: memref<1x16x342xbf16, #tpu.memory_space<vmem>>, %arg2: memref<4x144xbf16, #tpu.memory_space<vmem>>, %arg3: memref<4x1xf32, #tpu.memory_space<vmem>>, %arg4: memref<4x4xbf16, #tpu.memory_space<vmem>>, %arg5: memref<4x1xf32, #tpu.memory_space<vmem>>, %arg6: memref<1x4x288xf32, #tpu.memory_space<vmem>>) attributes {dimension_semantics = [#tpu.dimension_semantics<parallel>], iteration_bounds = array<i64: 2>, scalar_prefetch = 0 : i64, scratch_operands = 0 : i64, tpu.core_type = #tpu.core_type<tc>, window_params = [{transform_indices = @transform_0, window_bounds = array<i64: 1, 16, 342>}, {pipeline_mode = #tpu.pipeline_mode<synchronous>, transform_indices = @transform_1, window_bounds = array<i64: 4, 144>}, {pipeline_mode = #tpu.pipeline_mode<synchronous>, transform_indices = @transform_2, window_bounds = array<i64: 4, 1>}, {pipeline_mode = #tpu.pipeline_mode<synchronous>, transform_indices = @transform_3, window_bounds = array<i64: 4, 4>}, {pipeline_mode = #tpu.pipeline_mode<synchronous>, transform_indices = @transform_4, window_bounds = array<i64: 4, 1>}, {transform_indices = @transform_5, window_bounds = array<i64: 1, 4, 288>}]} {
    %c0 = arith.constant 0 : index
    %c0_0 = arith.constant 0 : index
    %c0_1 = arith.constant 0 : index
    %0 = vector.load %arg1[%c0, %c0_0, %c0_1] : memref<1x16x342xbf16, #tpu.memory_space<vmem>>, vector<1x16x342xbf16>
    %1 = vector.shape_cast %0 : vector<1x16x342xbf16> to vector<16x342xbf16>
    %2 = vector.extract_strided_slice %1 {offsets = [0, 0], sizes = [16, 288], strides = [1, 1]} : vector<16x342xbf16> to vector<16x288xbf16>
    %3 = vector.extract_strided_slice %1 {offsets = [0, 1], sizes = [16, 288], strides = [1, 1]} : vector<16x342xbf16> to vector<16x288xbf16>
    %4 = vector.extract_strided_slice %1 {offsets = [0, 2], sizes = [16, 288], strides = [1, 1]} : vector<16x342xbf16> to vector<16x288xbf16>
    %5 = vector.extract_strided_slice %1 {offsets = [0, 18], sizes = [16, 288], strides = [1, 1]} : vector<16x342xbf16> to vector<16x288xbf16>
    %6 = vector.extract_strided_slice %1 {offsets = [0, 19], sizes = [16, 288], strides = [1, 1]} : vector<16x342xbf16> to vector<16x288xbf16>
    %7 = vector.extract_strided_slice %1 {offsets = [0, 20], sizes = [16, 288], strides = [1, 1]} : vector<16x342xbf16> to vector<16x288xbf16>
    %8 = vector.extract_strided_slice %1 {offsets = [0, 36], sizes = [16, 288], strides = [1, 1]} : vector<16x342xbf16> to vector<16x288xbf16>
    %9 = vector.extract_strided_slice %1 {offsets = [0, 37], sizes = [16, 288], strides = [1, 1]} : vector<16x342xbf16> to vector<16x288xbf16>
    %10 = vector.extract_strided_slice %1 {offsets = [0, 38], sizes = [16, 288], strides = [1, 1]} : vector<16x342xbf16> to vector<16x288xbf16>
    %11 = tpu.concatenate %2, %3, %4, %5, %6, %7, %8, %9, %10 in 0 : vector<16x288xbf16>, vector<16x288xbf16>, vector<16x288xbf16>, vector<16x288xbf16>, vector<16x288xbf16>, vector<16x288xbf16>, vector<16x288xbf16>, vector<16x288xbf16>, vector<16x288xbf16> -> vector<144x288xbf16>
    %c0_2 = arith.constant 0 : index
    %c0_3 = arith.constant 0 : index
    %12 = vector.load %arg2[%c0_2, %c0_3] : memref<4x144xbf16, #tpu.memory_space<vmem>>, vector<4x144xbf16>
    %cst = arith.constant dense<0.000000e+00> : vector<4x288xf32>
    %13 = tpu.matmul %12, %11, %cst {dimension_numbers = #tpu.dot_dimension_numbers<[1], [0], [0], [1], [0, 0, 1, 1], [], []>} : vector<4x144xbf16>, vector<144x288xbf16>, vector<4x288xf32> -> vector<4x288xf32>
    %c0_4 = arith.constant 0 : index
    %c0_5 = arith.constant 0 : index
    %14 = vector.load %arg3[%c0_4, %c0_5] : memref<4x1xf32, #tpu.memory_space<vmem>>, vector<4x1xf32>
    %15 = vector.broadcast %14 : vector<4x1xf32> to vector<4x288xf32>
    %16 = arith.addf %13, %15 : vector<4x288xf32>
    %cst_6 = arith.constant 0.000000e+00 : f32
    %17 = vector.broadcast %cst_6 : f32 to vector<4x288xf32>
    %18 = arith.maximumf %16, %17 : vector<4x288xf32>
    %c0_7 = arith.constant 0 : index
    %c0_8 = arith.constant 0 : index
    %19 = vector.load %arg4[%c0_7, %c0_8] : memref<4x4xbf16, #tpu.memory_space<vmem>>, vector<4x4xbf16>
    %20 = arith.truncf %18 : vector<4x288xf32> to vector<4x288xbf16>
    %cst_9 = arith.constant dense<0.000000e+00> : vector<4x288xf32>
    %21 = tpu.matmul %19, %20, %cst_9 {dimension_numbers = #tpu.dot_dimension_numbers<[1], [0], [0], [1], [0, 0, 1, 1], [], []>} : vector<4x4xbf16>, vector<4x288xbf16>, vector<4x288xf32> -> vector<4x288xf32>
    %c0_10 = arith.constant 0 : index
    %c0_11 = arith.constant 0 : index
    %22 = vector.load %arg5[%c0_10, %c0_11] : memref<4x1xf32, #tpu.memory_space<vmem>>, vector<4x1xf32>
    %23 = vector.broadcast %22 : vector<4x1xf32> to vector<4x288xf32>
    %24 = arith.addf %21, %23 : vector<4x288xf32>
    %25 = vector.shape_cast %24 : vector<4x288xf32> to vector<1x4x288xf32>
    %c0_12 = arith.constant 0 : index
    %c0_13 = arith.constant 0 : index
    %c0_14 = arith.constant 0 : index
    %26 = vector.load %arg6[%c0_12, %c0_13, %c0_14] : memref<1x4x288xf32, #tpu.memory_space<vmem>>, vector<1x4x288xf32>
    tpu.vector_store %arg6[%c0_12, %c0_13, %c0_14], %25 {strides = array<i32>} : memref<1x4x288xf32, #tpu.memory_space<vmem>>, vector<1x4x288xf32>,
    return
  }
  func.func @transform_0(%arg0: i32) -> (i32, i32, i32) {
    %c0_i32 = arith.constant 0 : i32
    %c0_i32_0 = arith.constant 0 : i32
    %c0_i32_1 = arith.constant 0 : i32
    return %arg0, %c0_i32, %c0_i32_0 : i32, i32, i32
  }
  func.func @transform_1(%arg0: i32) -> (i32, i32) {
    %c0_i32 = arith.constant 0 : i32
    %c0_i32_0 = arith.constant 0 : i32
    %c0_i32_1 = arith.constant 0 : i32
    return %c0_i32, %c0_i32_0 : i32, i32
  }
  func.func @transform_2(%arg0: i32) -> (i32, i32) {
    %c0_i32 = arith.constant 0 : i32
    %c0_i32_0 = arith.constant 0 : i32
    %c0_i32_1 = arith.constant 0 : i32
    return %c0_i32, %c0_i32_0 : i32, i32
  }
  func.func @transform_3(%arg0: i32) -> (i32, i32) {
    %c0_i32 = arith.constant 0 : i32
    %c0_i32_0 = arith.constant 0 : i32
    %c0_i32_1 = arith.constant 0 : i32
    return %c0_i32, %c0_i32_0 : i32, i32
  }
  func.func @transform_4(%arg0: i32) -> (i32, i32) {
    %c0_i32 = arith.constant 0 : i32
    %c0_i32_0 = arith.constant 0 : i32
    %c0_i32_1 = arith.constant 0 : i32
    return %c0_i32, %c0_i32_0 : i32, i32
  }
  func.func @transform_5(%arg0: i32) -> (i32, i32, i32) {
    %c0_i32 = arith.constant 0 : i32
    %c0_i32_0 = arith.constant 0 : i32
    %c0_i32_1 = arith.constant 0 : i32
    return %arg0, %c0_i32, %c0_i32_0 : i32, i32, i32
  }
}

</mosaic_0001>

<bundles_post_ra>
// kernel: fcn_head_forward.1
= control target key start
LH: loop header
LB: loop body
LE: loop exit
PB: predicated region body
PF: predicated region fallthrough
CT: control target
= control target key end

     0   :  { %s716_s18 = smov 0   ;;  %s767_s0 = inlined_call_operand.vmem [shape: bf16[2,16,342], index: 0, kind: input, shape index: {}]   ;;  %s768_s1 = inlined_call_operand.vmem [shape: bf16[4,144], index: 1, kind: input, shape index: {}]   ;;  %s769_s2 = inlined_call_operand.vmem [shape: f32[4,1], index: 2, kind: input, shape index: {}]   ;;  %s770_s3 = inlined_call_operand.vmem [shape: bf16[4,4], index: 3, kind: input, shape index: {}]   ;;  %s771_s4 = inlined_call_operand.vmem [shape: f32[4,1], index: 4, kind: input, shape index: {}]   ;;  %s772_s5 = inlined_call_operand.vmem [shape: f32[2,4,288], index: 5, kind: output, shape index: {}]  }
   0x1 LB: > { %s614_s19 = sadd.s32 4294967295, %s673_s18   ;;  %p618_p0 = scmp.ge.s32.totalorder %s673_s18, 1  ;;  %s673_s18 = sphi %s716_s18, %s15_s18  }
   0x2   : > { %p187_p1 = scmp.lt.s32.totalorder %s673_s18, 3 }
   0x4   : > { %p188_p2 = pnand %p618_p0, %p187_p1 }
   0x5   : > { %p215_p3 = scmp.lt.s32.totalorder (!%p188_p2), %s614_s19, 1  ;;  %v675_v0 = vmov (!%p188_p2), 0   ;;  %s676_s24 = smov (!%p188_p2), 127   ;;  %vm359_vm0 = vcmask (!%p188_p2), 130048   ;;  %v343_v6 = vld [vmem:[%s769_s2] sm:$0xf] (!%p188_p2) }
   0x6   : > { %191 = sbr.rel (%p188_p2) target bundleno = 623 (0x26f), region = 40  ;;  %404 = vmatprep.subr.bf16.mxu1 (!%p188_p2), %v675_v0  ;;  %661 = vset.pattern.permute.xlu0 (!%p188_p2), %v675_v0  ;;  %s677_s25 = smov (!%p188_p2), 126   ;;  %v737_v4 = vld.sshfl [vmem:[%s768_s1] sm:$0x33 pattern:$0x76325410] (!%p188_p2) }
   0x7   : > { %662 = vset.pattern.permute.xlu1 (!%p188_p2), %v675_v0  ;;  %s678_s26 = smov (!%p188_p2), 110   ;;  %s679_s27 = smov (!%p188_p2), 109   ;;  %v357_v5 = vcombine.high (!%p188_p2), %v737_v4, %v737_v4  ;;  %vm252_vm1 = vcmask (!%p188_p2), 1039360   ;;  %vm264_vm2 = vcmask (!%p188_p2), 1031168   ;;  %vm276_vm3 = vcmask (!%p188_p2), 900096  }
   0x8   : > { %s680_s28 = smov (!%p188_p2), 108   ;;  %s681_s29 = smov (!%p188_p2), 92   ;;  %vm288_vm4 = vcmask (!%p188_p2), 891904   ;;  %vm300_vm5 = vcmask (!%p188_p2), 883712   ;;  %vm312_vm6 = vcmask (!%p188_p2), 752640   ;;  %vm324_vm7 = vcmask (!%p188_p2), 744448  }
   0x9   : > { %s682_s7 = smov (!%p188_p2), 91   ;;  %625 = vmatprep.mubr.msk.bf16.mxu0 (!%p188_p2), %vm359_vm0, %v357_v5  ;;  %626 = vmatprep.mubr.msk.bf16.mxu1 (!%p188_p2), %vm359_vm0, %v357_v5  ;;  %s683_s8 = smov (!%p188_p2), 90   ;;  %vm336_vm8 = vcmask (!%p188_p2), 736256   ;;  %v684_v47 = vmov (!%p188_p2), 0.0   ;;  %vm685_vm9 = vmmov (!%p188_p2), 0   ;;  %vm461_vm10 = vcmask (!%p188_p2), 1041408  }
   0xa   : > { %v451_v48 = vld [vmem:[%s771_s4] sm:$0xf] (!%p188_p2)  ;;  %vm457_vm11 = vcmask (!%p188_p2), 31744   ;;  %vm557_vm12 = vcmask (!%p188_p2), 257024  }
   0xd   : > { %s774_s19 = smov (!%p215_p3, %s614_s19), 1 }
   0xe   : > { %s640_s20 = smul.u32 24, %s774_s19 }
   0xf   : > { %s641_s15 = smul.u32 12, %s774_s19 }
  0x10   : > { %s219_s23 = scalar_lea.vmem %s767_s0, %s640_s20 }
  0x11   : > { %v663_v1 = vld [vmem:[%s219_s23 + $0x4] ss:$12 sps:$4 sm:$0xff]   ;;  %v665_v2 = vld [vmem:[%s219_s23] ss:$12 sps:$4 sm:$0xff]   ;;  %v666_v3 = vld [vmem:[%s219_s23 + $0x8] ss:$12 sps:$4 sm:$0xff]   ;;  %s224_s20 = scalar_lea.vmem %s772_s5, %s641_s15 }
  0x12   : > { %248 = vrot.lane.b32.xlu0 %v663_v1, %s676_s24  ;;  %363 = vmatprep.subr.bf16.mxu0 %v663_v1 }
  0x13   : > { %246 = vrot.lane.b32.xlu1 %v665_v2, %s676_s24  ;;  %364 = vmatpush1.bf16.msra.mxu0 %v665_v2 }
  0x14   : > { %405 = vmatpush1.bf16.msra.mxu1 %v666_v3 }
  0x15   : > { %406 = vmatprep.subr.bf16.mxu1 %v675_v0 }
  0x16   : > { %250 = vrot.lane.b32.xlu0 %v666_v3, %s676_s24 }
  0x17   : > { %260 = vrot.lane.b32.xlu1 %v663_v1, %s677_s25 }
  0x1a   : > { %262 = vrot.lane.b32.xlu0 %v666_v3, %s677_s25 }
  0x1b   : > { %258 = vrot.lane.b32.xlu1 %v665_v2, %s677_s25 }
  0x1e   : > { %272 = vrot.lane.b32.xlu0 %v663_v1, %s678_s26 }
  0x1f   : > { %274 = vrot.lane.b32.xlu1 %v666_v3, %s678_s26 }
  0x22   : > { %270 = vrot.lane.b32.xlu0 %v665_v2, %s678_s26 }
  0x23   : > { %284 = vrot.lane.b32.xlu1 %v663_v1, %s679_s27 }
  0x26   : > { %286 = vrot.lane.b32.xlu0 %v666_v3, %s679_s27 }
  0x27   : > { %282 = vrot.lane.b32.xlu1 %v665_v2, %s679_s27 }
  0x2a   : > { %296 = vrot.lane.b32.xlu0 %v663_v1, %s680_s28 }
  0x2b   : > { %298 = vrot.lane.b32.xlu1 %v666_v3, %s680_s28 }
  0x2e   : > { %294 = vrot.lane.b32.xlu0 %v665_v2, %s680_s28 }
  0x2f   : > { %308 = vrot.lane.b32.xlu1 %v663_v1, %s681_s29 }
  0x32   : > { %310 = vrot.lane.b32.xlu0 %v666_v3, %s681_s29 }
  0x33   : > { %306 = vrot.lane.b32.xlu1 %v665_v2, %s681_s29 }
  0x36   : > { %320 = vrot.lane.b32.xlu0 %v663_v1, %s682_s7 }
  0x37   : > { %322 = vrot.lane.b32.xlu1 %v666_v3, %s682_s7 }
  0x3a   : > { %318 = vrot.lane.b32.xlu0 %v665_v2, %s682_s7 }
  0x3b   : > { %332 = vrot.lane.b32.xlu1 %v663_v1, %s683_s8 }
  0x3e   : > { %334 = vrot.lane.b32.xlu0 %v666_v3, %s683_s8 }
  0x3f   : > { %330 = vrot.lane.b32.xlu1 %v665_v2, %s683_s8 }
  0x42   : > { %346 = vperm.xlu0 %661, %v343_v6  }
  0x43   : > { %454 = vperm.xlu1 %662, %v451_v48  }
  0x84   : > { %v249_v7 = vpop.permute.xlu0 %248 }
  0x85   : > { %v247_v8 = vpop.permute.xlu1 %246 }
  0x86   : > { %v253_v12 = vsel %vm252_vm1, %v247_v8, %v249_v7 }
  0x88   : > { %v251_v9 = vpop.permute.xlu0 %250 }
  0x89   : > { %v261_v10 = vpop.permute.xlu1 %260  ;;  %407 = vmatpush1.bf16.msra.mxu1 %v251_v9  ;;  %v254_v11 = vsel %vm252_vm1, %v249_v7, %v251_v9 }
  0x8a   : > { %365 = vmatprep.subr.bf16.mxu0 %v254_v11  ;;  %408 = vmatprep.subr.bf16.mxu1 %v675_v0 }
  0x8b   : > { %366 = vmatpush1.bf16.msra.mxu0 %v253_v12 }
  0x8c   : > { %v263_v13 = vpop.permute.xlu0 %262 }
  0x8d   : > { %v259_v14 = vpop.permute.xlu1 %258  ;;  %409 = vmatpush1.bf16.msra.mxu1 %v263_v13  ;;  %v266_v15 = vsel %vm264_vm2, %v261_v10, %v263_v13 }
  0x8e   : > { %367 = vmatprep.subr.bf16.mxu0 %v266_v15  ;;  %v265_v16 = vsel %vm264_vm2, %v259_v14, %v261_v10  ;;  %410 = vmatprep.subr.bf16.mxu1 %v675_v0 }
  0x8f   : > { %368 = vmatpush1.bf16.msra.mxu0 %v265_v16 }
  0x90   : > { %v273_v17 = vpop.permute.xlu0 %272 }
  0x91   : > { %v275_v18 = vpop.permute.xlu1 %274 }
  0x92   : > { %v278_v19 = vsel %vm276_vm3, %v273_v17, %v275_v18  ;;  %411 = vmatpush1.bf16.msra.mxu1 %v275_v18 }
  0x93   : > { %369 = vmatprep.subr.bf16.mxu0 %v278_v19  ;;  %412 = vmatprep.subr.bf16.mxu1 %v675_v0 }
  0x94   : > { %v271_v20 = vpop.permute.xlu0 %270 }
  0x95   : > { %v285_v21 = vpop.permute.xlu1 %284  ;;  %v277_v22 = vsel %vm276_vm3, %v271_v20, %v273_v17 }
  0x96   : > { %370 = vmatpush1.bf16.msra.mxu0 %v277_v22 }
  0x98   : > { %v287_v23 = vpop.permute.xlu0 %286 }
  0x99   : > { %v283_v24 = vpop.permute.xlu1 %282  ;;  %413 = vmatpush1.bf16.msra.mxu1 %v287_v23  ;;  %v290_v25 = vsel %vm288_vm4, %v285_v21, %v287_v23 }
  0x9a   : > { %371 = vmatprep.subr.bf16.mxu0 %v290_v25  ;;  %v289_v26 = vsel %vm288_vm4, %v283_v24, %v285_v21  ;;  %414 = vmatprep.subr.bf16.mxu1 %v675_v0 }
  0x9b   : > { %372 = vmatpush1.bf16.msra.mxu0 %v289_v26 }
  0x9c   : > { %v297_v27 = vpop.permute.xlu0 %296 }
  0x9d   : > { %v299_v28 = vpop.permute.xlu1 %298 }
  0x9e   : > { %v302_v29 = vsel %vm300_vm5, %v297_v27, %v299_v28  ;;  %415 = vmatpush1.bf16.msra.mxu1 %v299_v28 }
  0x9f   : > { %373 = vmatprep.subr.bf16.mxu0 %v302_v29  ;;  %416 = vmatprep.subr.bf16.mxu1 %v675_v0 }
  0xa0   : > { %v295_v30 = vpop.permute.xlu0 %294 }
  0xa1   : > { %v309_v31 = vpop.permute.xlu1 %308  ;;  %v301_v32 = vsel %vm300_vm5, %v295_v30, %v297_v27 }
  0xa2   : > { %374 = vmatpush1.bf16.msra.mxu0 %v301_v32 }
  0xa4   : > { %v311_v33 = vpop.permute.xlu0 %310 }
  0xa5   : > { %v307_v34 = vpop.permute.xlu1 %306  ;;  %417 = vmatpush1.bf16.msra.mxu1 %v311_v33  ;;  %v314_v35 = vsel %vm312_vm6, %v309_v31, %v311_v33 }
  0xa6   : > { %375 = vmatprep.subr.bf16.mxu0 %v314_v35  ;;  %v313_v36 = vsel %vm312_vm6, %v307_v34, %v309_v31  ;;  %418 = vmatprep.subr.bf16.mxu1 %v675_v0 }
  0xa7   : > { %376 = vmatpush1.bf16.msra.mxu0 %v313_v36 }
  0xa8   : > { %v321_v37 = vpop.permute.xlu0 %320 }
  0xa9   : > { %v323_v38 = vpop.permute.xlu1 %322 }
  0xaa   : > { %v326_v39 = vsel %vm324_vm7, %v321_v37, %v323_v38  ;;  %419 = vmatpush1.bf16.msra.mxu1 %v323_v38 }
  0xab   : > { %377 = vmatprep.subr.bf16.mxu0 %v326_v39  ;;  %420 = vmatprep.subr.bf16.mxu1 %v675_v0 }
  0xac   : > { %v319_v40 = vpop.permute.xlu0 %318 }
  0xad   : > { %v333_v41 = vpop.permute.xlu1 %332  ;;  %v325_v42 = vsel %vm324_vm7, %v319_v40, %v321_v37 }
  0xae   : > { %378 = vmatpush1.bf16.msra.mxu0 %v325_v42 }
  0xb0   : > { %v335_v43 = vpop.permute.xlu0 %334 }
  0xb1   : > { %v331_v44 = vpop.permute.xlu1 %330  ;;  %421 = vmatpush1.bf16.msra.mxu1 %v335_v43  ;;  %v338_v45 = vsel %vm336_vm8, %v333_v41, %v335_v43 }
  0xb2   : > { %379 = vmatprep.subr.bf16.mxu0 %v338_v45  ;;  %v337_v46 = vsel %vm336_vm8, %v331_v44, %v333_v41  ;;  %634 = vmatprep.subr.bf16.mxu1 %v684_v47 }
  0xb3   : > { %380 = vmatpush1.bf16.msra.mxu0 %v337_v46 }
  0xb4   : > { %437 = vmatmul.mubr.bf16.vlgmr.msra.gmra.mrb[0].mxu1 %v737_v4 }
  0xb5   : > { %636 = vmatprep.mubr.msk.bf16.mxu1 %vm685_vm9, %v684_v47 }
  0xb6   : > { %396 = vmatmul.mubr.bf16.vlgmr.msra.gmra.mrb[0].mxu0 %v737_v4  ;;  %v447_v4 = vld [vmem:[%s770_s3] sm:$0x3] }
  0xb7   : > { %503 = vmatprep.mubr.bf16.mxu0 %v675_v0 }
  0xc1   : > { %v347_v49 = vpop.permute.xlu0 %346 }
  0xc2   : > { %v455_v6 = vpop.permute.xlu1 %454 }
 0x187   : > { %v438_v50 = vpop.f32.mrb[0].mxu1 }
 0x188   : > { %v439_v51 = vadd.f32 %v438_v50, %v347_v49  ;;  %v440_v52 = vpop.f32.mrb[1].mxu1 }
 0x189   : > { %v397_v53 = vpop.f32.mrb[0].mxu0  ;;  %v441_v54 = vpop.f32.mrb[2].mxu1 }
 0x18a   : > { %v398_v55 = vadd.f32 %v397_v53, %v347_v49  ;;  %v399_v56 = vpop.f32.mrb[1].mxu0  ;;  %v446_v57 = vmax.f32 %v439_v51, 0.0  ;;  %v442_v58 = vpop.f32.mrb[3].mxu1 }
 0x18b   : > { %v400_v59 = vadd.f32 %v399_v56, %v347_v49  ;;  %v401_v60 = vpop.f32.mrb[2].mxu0 }
 0x18c   : > { %v444_v61 = vmax.f32 %v398_v55, 0.0  ;;  %v450_v62 = vpack.c.bf16 %v446_v57, %v446_v57  ;;  %v402_v63 = vpop.f32.mrb[3].mxu0 }
 0x18d   : > { %v445_v0 = vmax.f32 %v400_v59, 0.0 }
 0x18e   : > { %v448_v1 = vpack.c.bf16 %v444_v61, %v444_v61  ;;  %v469_v2 = vsel %vm461_vm10, %v450_v62, 0 }
 0x18f   : > { %v449_v3 = vpack.c.bf16 %v445_v0, %v445_v0  ;;  %635 = vmatpush3.bf16.msra.mxu1 %v469_v2 }
 0x190   : > { %v463_v5 = vsel %vm461_vm10, %v448_v1, 0 }
 0x191   : > { %627 = vmatprep.subr.msk.bf16.mxu0 %vm461_vm10, %v449_v3 }
 0x192   : > { %472 = vmatpush1.bf16.msra.mxu0 %v463_v5  ;;  %637 = vmatmul.mubr.msk.bf16.vlgmr.msra.gmra.mrb[4].mxu1 %vm457_vm11, %v447_v4 }
 0x195   : > { %628 = vmatmul.mubr.msk.bf16.vlgmr.msra.gmra.mrb[4].mxu0 %vm457_vm11, %v447_v4 }
 0x265   : > { %v546_v7 = vpop.f32.mrb[4].mxu1 }
 0x266   : > { %v547_v8 = vadd.f32 %v546_v7, %v455_v6  ;;  %v638_v9 = vpop.f32.mrb[5].mxu1 }
 0x267   : > { %v549_v10 = vpop.f32.mrb[6].mxu1 }
 0x268   : > { %v505_v11 = vpop.f32.mrb[4].mxu0  ;;  %558 = vst.msk [vmem:[%s224_s20 + $0x8] sm:$0xf] %vm557_vm12, %v547_v8  ;;  %v639_v12 = vpop.f32.mrb[7].mxu1 }
 0x269   : > { %v507_v13 = vpop.f32.mrb[5].mxu0  ;;  %v506_v14 = vadd.f32 %v505_v11, %v455_v6 }
 0x26a   : > { %v509_v15 = vpop.f32.mrb[6].mxu0  ;;  %v508_v16 = vadd.f32 %v507_v13, %v455_v6 }
 0x26b   : > { %v510_v17 = vpop.f32.mrb[7].mxu0 }
 0x26c   : > { %v554_v18 = vcombine.low %v506_v14, %v508_v16 }
 0x26e   : > { %556 = vst [vmem:[%s224_s20] sm:$0xff] %v554_v18 }
 0x26f PF: > { %s15_s18 = sadd.s32 1, %s673_s18  }
 0x270   : > { %p12_p4 = scmp.ge.s32.totalorder %s15_s18, 4  }
 0x272   :  { %14 = sbr.rel (!%p12_p4) target bundleno = 1 (0x1), region = 70 }

</bundles_post_ra>
